<compile_context>
chip_gen: v7x
topology: tpu7x:2x2x1
jax: 0.10.0
libtpu: 0.0.40
codegen_flags: <defaults>
</compile_context>

<pallas_src>
import jax
import jax.numpy as jnp
from jax import lax
from jax.experimental import pallas as pl
from jax.experimental.pallas import tpu as pltpu


_LANE = 128               # vreg lane width
_SINGLE_CALL_ROWS = 512   # at/below this, one un-gridded call (everything fits VMEM)


def _round_up(x, m):
    return (x + m - 1) // m * m


def _merge_linear_kernel(a_ref, w_ref, b_ref, o_ref):
    # a_ref: (tm, K) token rows; w_ref: (K, N) resident weight; b_ref: (1, N) bias.
    acc = jnp.dot(a_ref[...], w_ref[...],
                  preferred_element_type=jnp.float32,
                  precision=lax.Precision.HIGHEST)
    o_ref[...] = (acc + b_ref[...].astype(jnp.float32)).astype(o_ref.dtype)


def _merge_linear(a, w, b, *, out_dtype, tile_m=4096):
    """out = a @ w + b, row-tiled over the token dimension."""
    M, K = a.shape
    N = w.shape[1]
    out_shape = jax.ShapeDtypeStruct((M, N), out_dtype)

    if M <= _SINGLE_CALL_ROWS:
        # Tiny problem: single un-gridded call, whole operands resident in VMEM,
        # no per-step pipeline overhead, one MXU launch.
        return pl.pallas_call(_merge_linear_kernel, out_shape=out_shape)(a, w, b)

    # Row-tiled grid. Tile choice:
    #   * >= 512 rows / step  -> well above the ~0.35us fixed step overhead,
    #   * >= 8 steps when M allows -> "parallel" axis shards across both v7x cores,
    #   * <= tile_m (default 4096) -> ~12 MiB double-buffered f32 tiles, under the
    #     16 MiB default scoped-VMEM limit on v5e (raise vmem_limit_bytes to go bigger).
    tm = max(_SINGLE_CALL_ROWS, min(tile_m, _round_up(pl.cdiv(M, 8), 8)))
    grid = (pl.cdiv(M, tm),)  # ragged last block is clamped/masked by Pallas

    return pl.pallas_call(
        _merge_linear_kernel,
        out_shape=out_shape,
        grid=grid,
        in_specs=[
            pl.BlockSpec((tm, K), lambda i: (i, 0)),   # streamed activation rows
            pl.BlockSpec((K, N), lambda i: (0, 0)),    # weight resident across steps
            pl.BlockSpec((1, N), lambda i: (0, 0)),    # bias resident across steps
        ],
        out_specs=pl.BlockSpec((tm, N), lambda i: (i, 0)),
        compiler_params=pltpu.CompilerParams(
            dimension_semantics=("parallel",)),
    )(a, w, b)


def component_merging(x, weight, bias, patch_size, *, version="v2",
                      activation_dtype=None, tile_m=4096):
    """Pallas forward of ComponentMerging (norm_layer=None -> Identity)."""
    B, H, W, T, C = x.shape
    p = patch_size
    assert H % p == 0 and W % p == 0, (H, W, p)
    h, w = H // p, W // p
    K = p * p * C
    N = weight.shape[0]
    assert weight.shape == (N, K), weight.shape

    # --- patch rearrange (layout only, once, wrapper-side) --------------------
    if version == "v1":
        a = x.reshape(B, h, w, T, K)            # raw reshape, free
    else:
        # 'b (p1 h) (p2 w) t c -> b h w t (p1 p2 c)': one strided copy (XLA fuses
        # the transpose + surrounding reshapes into a single kernel).
        # TODO(synk): fuse this copy into the pallas_call input DMA
        # (allow_input_fusion / pl.ANY strided loads) to avoid the HBM round trip.
        a = (x.reshape(B, p, h, p, w, T, C)
              .transpose(0, 2, 4, 5, 1, 3, 6)
              .reshape(B, h, w, T, K))

    # norm_layer=None -> nn.Identity: no-op.
    # TODO(synk): a non-default norm_layer (e.g. LayerNorm over p*p*C) is not fused.

    M = B * h * w * T
    a2d = a.reshape(M, K)
    wt = weight.T                               # (K, N): y = x @ W^T + b
    b2 = bias.reshape(1, N)

    # --- lane-dense repack -----------------------------------------------------
    # Group r consecutive tokens per matmul row with a block-diagonal weight so the
    # output width r*N is a multiple of the 128-lane vreg width (dense, unmasked
    # stores; fuller input vregs and MXU K). Output (M/r, r*N) is the contiguous
    # reshape of (M, N).
    r = 1
    if N < _LANE and _LANE % N == 0:
        r_cand = _LANE // N
        if M % r_cand == 0:
            r = r_cand
    if r > 1:
        a2d = a2d.reshape(M // r, r * K)
        wt = jax.scipy.linalg.block_diag(*([wt] * r))   # (r*K, r*N)
        b2 = jnp.tile(b2, (1, r))                       # (1, r*N)

    if activation_dtype is not None:
        # Optional bandwidth saver (e.g. jnp.bfloat16); accumulation stays f32.
        a2d = a2d.astype(activation_dtype)
        wt = wt.astype(activation_dtype)

    out2d = _merge_linear(a2d, wt, b2, out_dtype=x.dtype, tile_m=tile_m)
    return out2d.reshape(B, h, w, T, N)


def reference(x, weight, bias, patch_size, version="v2"):
    """Pure-JAX replica of the PyTorch forward, for validation only."""
    B, H, W, T, C = x.shape
    p = patch_size
    h, w = H // p, W // p
    if version == "v1":
        xr = x.reshape(B, h, w, T, p * p * C)
    else:
        xr = (x.reshape(B, p, h, p, w, T, C)
               .transpose(0, 2, 4, 5, 1, 3, 6)
               .reshape(B, h, w, T, p * p * C))
    y = jnp.einsum("bhwtk,nk->bhwtn", xr, weight,
                   precision=lax.Precision.HIGHEST)
    return y + bias


def _run_case(key, B, H, W, T, C, p, out_dim, version):
    kx, kw, kb = jax.random.split(key, 3)
    K = p * p * C
    x = jax.random.normal(kx, (B, H, W, T, C), jnp.float32)
    weight = 0.1 * jax.random.normal(kw, (out_dim, K), jnp.float32)  # reduction.weight
    bias = 0.1 * jax.random.normal(kb, (out_dim,), jnp.float32)      # reduction.bias

    out = component_merging(x, weight, bias, p, version=version)
    out = jax.block_until_ready(out)

    ref = reference(x, weight, bias, p, version=version)
    assert out.shape == (B, H // p, W // p, T, out_dim), out.shape
    assert jnp.allclose(out, ref, atol=1e-4, rtol=1e-4), float(
        jnp.max(jnp.abs(out - ref)))


if __name__ == "__main__":
    key = jax.random.PRNGKey(0)
    k1, k2 = jax.random.split(key)

    # Module config from the spec: dim=4 (C), patch_size=4, out_dim=32, bias=True,
    # norm_layer=None (Identity), version='v2'.  Small shape -> single-call path.
    _run_case(k1, B=2, H=16, W=16, T=8, C=4, p=4, out_dim=32, version="v2")

    # Larger shape -> exercises the row-tiled grid path (2 "parallel" tiles, ragged
    # last block) and the v1 branch.
    _run_case(k2, B=2, H=32, W=32, T=24, C=4, p=4, out_dim=32, version="v1")

    print("KERNEL_OK")
</pallas_src>

<mosaic_0001>
module attributes {stable_mosaic.version = 11 : i64} {
  func.func @_merge_linear_kernel(%arg0: memref<64x256xf32, #tpu.memory_space<vmem>>, %arg1: memref<256x128xf32, #tpu.memory_space<vmem>>, %arg2: memref<1x128xf32, #tpu.memory_space<vmem>>, %arg3: memref<64x128xf32, #tpu.memory_space<vmem>>) attributes {dimension_semantics = [], scalar_prefetch = 0 : i64, scratch_operands = 0 : i64, tpu.core_type = #tpu.core_type<tc>} {
    %c0 = arith.constant 0 : index
    %c0_0 = arith.constant 0 : index
    %0 = vector.load %arg0[%c0, %c0_0] : memref<64x256xf32, #tpu.memory_space<vmem>>, vector<64x256xf32>
    %c0_1 = arith.constant 0 : index
    %c0_2 = arith.constant 0 : index
    %1 = vector.load %arg1[%c0_1, %c0_2] : memref<256x128xf32, #tpu.memory_space<vmem>>, vector<256x128xf32>
    %cst = arith.constant dense<0.000000e+00> : vector<64x128xf32>
    %2 = tpu.matmul %0, %1, %cst {dimension_numbers = #tpu.dot_dimension_numbers<[1], [0], [0], [1], [0, 0, 1, 1], [], []>, precision = #tpu.contract_precision<fp32>} : vector<64x256xf32>, vector<256x128xf32>, vector<64x128xf32> -> vector<64x128xf32>
    %c0_3 = arith.constant 0 : index
    %c0_4 = arith.constant 0 : index
    %3 = vector.load %arg2[%c0_3, %c0_4] : memref<1x128xf32, #tpu.memory_space<vmem>>, vector<1x128xf32>
    %4 = vector.broadcast %3 : vector<1x128xf32> to vector<64x128xf32>
    %5 = arith.addf %2, %4 : vector<64x128xf32>
    %c0_5 = arith.constant 0 : index
    %c0_6 = arith.constant 0 : index
    %6 = vector.load %arg3[%c0_5, %c0_6] : memref<64x128xf32, #tpu.memory_space<vmem>>, vector<64x128xf32>
    tpu.vector_store %arg3[%c0_5, %c0_6], %5 {strides = array<i32>} : memref<64x128xf32, #tpu.memory_space<vmem>>, vector<64x128xf32>,
    return
  }
}

</mosaic_0001>

<bundles_post_ra>
// kernel: tpu_custom_call.1
= control target key start
LH: loop header
LB: loop body
LE: loop exit
PB: predicated region body
PF: predicated region fallthrough
CT: control target
= control target key end

     0   :  { %8 = vsyncpa [#allocation3], 0  ;;  %s2681_s0 = inlined_call_operand.hbm [shape: f32[64,256], index: 0, kind: input, shape index: {}]   ;;  %s2682_s1 = inlined_call_operand.hbm [shape: f32[256,128], index: 1, kind: input, shape index: {}]   ;;  %s2683_s2 = inlined_call_operand.vmem [shape: f32[1,128], index: 2, kind: input, shape index: {}]   ;;  %s2684_s3 = inlined_call_operand.hbm [shape: f32[64,128], index: 3, kind: output, shape index: {}]  }
   0x1   :  { %9 = vsyncpa [#allocation6], 0 }
   0x2   :  { %10 = vsyncpa [#allocation4], 0  ;;  %s1986_s12 = smov [#allocation2]   ;;  %s1914_s16 = scalar_lea.hbm %s2681_s0, 2048 }
   0x3   :  { %s16_s13 = sshll.u32 %s1986_s12, 4  ;;  %p1915_p0 = scmp.ne.s32.totalorder %s2681_s0, %s1914_s16  ;;  %s17_s13 = int_to_ptr.vmem [resolvable:$true] %s16_s13 }
   0x4   :  { %p1918_p1 = scmp.lt.u32.totalorder %s1914_s16, %s2681_s0 }
   0x6   :  { %p1920_p2 = pnand %p1918_p1, %p1915_p0 }
   0x8   :  { %1923 = shalt.err (!%p1920_p2)
}
   0x9   :  { %s1924_s21 = scalar_lea.vmem %s17_s13, 2048  ;;  %p1929_p4 = scmp.lt.s32.totalorder %s17_s13, %s17_s13 }
   0xa   :  { %p1925_p3 = scmp.ne.s32.totalorder %s17_s13, %s1924_s21  ;;  %p1930_p5 = scmp.lt.s32.totalorder %s1924_s21, %s1924_s21 }
   0xc   :  { %p1931_p6 = por %p1930_p5, %p1929_p4 }
   0xe   :  { %p1932_p7 = pnand %p1931_p6, %p1925_p3 }
  0x10   :  { %1935 = shalt.err (!%p1932_p7)
}
  0x11   :  { %s1987_s22 = smov 256   ;;  %s1988_s23 = smov 16  }
  0x12   :  { %22 = dma.hbm_to_vmem [thread:$0]  %s2681_s0, 2048, %s17_s13, [#allocation3], %s1987_s22, %s1987_s22, %s1988_s23  }
  0x13   :  { %s1989_s26 = smov [#allocation5]   ;;  %s1936_s30 = scalar_lea.hbm %s2682_s1, 4096 }
  0x14   :  { %s28_s27 = sshll.u32 %s1989_s26, 4  ;;  %p1937_p8 = scmp.ne.s32.totalorder %s2682_s1, %s1936_s30  ;;  %s29_s27 = int_to_ptr.vmem [resolvable:$true] %s28_s27 }
  0x15   :  { %p1940_p9 = scmp.lt.u32.totalorder %s1936_s30, %s2682_s1 }
  0x17   :  { %p1942_p10 = pnand %p1940_p9, %p1937_p8 }
  0x19   :  { %1945 = shalt.err (!%p1942_p10)
}
  0x1a   :  { %s1946_s8 = scalar_lea.vmem %s29_s27, 4096  ;;  %p1951_p12 = scmp.lt.s32.totalorder %s29_s27, %s29_s27 }
  0x1b   :  { %p1947_p11 = scmp.ne.s32.totalorder %s29_s27, %s1946_s8  ;;  %p1952_p13 = scmp.lt.s32.totalorder %s1946_s8, %s1946_s8 }
  0x1d   :  { %p1953_p0 = por %p1952_p13, %p1951_p12 }
  0x1f   :  { %p1954_p1 = pnand %p1953_p0, %p1947_p11 }
  0x21   :  { %1957 = shalt.err (!%p1954_p1)
}
  0x22   :  { %s1990_s0 = smov 128   ;;  %s1991_s9 = smov 8  }
  0x23   :  { %34 = dma.hbm_to_vmem [thread:$0]  %s2682_s1, 4096, %s29_s27, [#allocation6], %s1990_s0, %s1990_s0, %s1991_s9  }
  0x24   :  { %1980 = dma.done.wait [#allocation3], 2048  }
  0x25   :  { %1981 = vsyncadd [#allocation3], 4294965248 }
  0x26   :  { %1982 = dma.done.wait [#allocation6], 4096  }
  0x27   :  { %1983 = vsyncadd [#allocation6], 4294963200  ;;  %v75_v0 = vld [vmem:[#allocation5 + $0x80] sm:$0xff]  ;;  %v76_v1 = vld [vmem:[#allocation5 + $0x88] sm:$0xff] }
  0x28   :  { %v59_v2 = vld [vmem:[#allocation5] sm:$0xff]  ;;  %v147_v3 = vand.u32 4294901760, %v75_v0  ;;  %v150_v4 = vand.u32 4294901760, %v76_v1  ;;  %v60_v5 = vld [vmem:[#allocation5 + $0x8] sm:$0xff]  ;;  %v77_v7 = vld [vmem:[#allocation5 + $0x90] sm:$0xff] }
  0x29   :  { %v99_v6 = vand.u32 4294901760, %v59_v2  ;;  %v78_v8 = vld [vmem:[#allocation5 + $0x98] sm:$0xff]  ;;  %v102_v9 = vand.u32 4294901760, %v60_v5  ;;  %v153_v10 = vand.u32 4294901760, %v77_v7  ;;  %v61_v12 = vld [vmem:[#allocation5 + $0x10] sm:$0xff]  ;;  %v79_v18 = vld [vmem:[#allocation5 + $0xa0] sm:$0xff] }
  0x2a   :  { %v156_v11 = vand.u32 4294901760, %v78_v8  ;;  %v62_v13 = vld [vmem:[#allocation5 + $0x18] sm:$0xff]  ;;  %v2040_v14 = vpack.c.bf16 %v150_v4, %v147_v3  ;;  %v105_v16 = vand.u32 4294901760, %v61_v12  ;;  %v80_v19 = vld [vmem:[#allocation5 + $0xa8] sm:$0xff]  ;;  %v63_v24 = vld [vmem:[#allocation5 + $0x20] sm:$0xff]  ;;  %v159_v30 = vand.u32 4294901760, %v79_v18 }
  0x2b   :  { %v2042_v15 = vsub.f32 %v59_v2, %v99_v6  ;;  %v108_v17 = vand.u32 4294901760, %v62_v13  ;;  %v2044_v20 = vpack.c.bf16 %v102_v9, %v99_v6  ;;  %v2046_v21 = vsub.f32 %v60_v5, %v102_v9  ;;  %v64_v25 = vld [vmem:[#allocation5 + $0x28] sm:$0xff]  ;;  %v81_v38 = vld [vmem:[#allocation5 + $0xb0] sm:$0xff]  ;;  %v82_v43 = vld [vmem:[#allocation5 + $0xb8] sm:$0xff] }
  0x2c   :  { %v2048_v22 = vpack.c.bf16 %v156_v11, %v153_v10  ;;  %v2050_v23 = vsub.f32 %v77_v7, %v153_v10  ;;  %1716 = vmatprep.subr.bf16.mxu0 %v2040_v14  ;;  %v2053_v26 = vsub.f32 %v78_v8, %v156_v11  ;;  %v2057_v28 = vsub.f32 %v61_v12, %v105_v16  ;;  %v65_v56 = vld [vmem:[#allocation5 + $0x30] sm:$0xff]  ;;  %v66_v57 = vld [vmem:[#allocation5 + $0x38] sm:$0xff]  ;;  %v83_v6 = vld [vmem:[#allocation5 + $0xc0] sm:$0xff] }
  0x2d   :  { %2795 = vst [vmem:[#allocation11_spill] sm:$0xff] %v2044_v20  ;;  %v2055_v27 = vpack.c.bf16 %v108_v17, %v105_v16  ;;  %v2059_v29 = vsub.f32 %v62_v13, %v108_v17  ;;  %1718 = vmatpush3.bf16.msra.mxu0 %v2044_v20  ;;  %v162_v31 = vand.u32 4294901760, %v80_v19  ;;  %v2062_v32 = vsub.f32 %v75_v0, %v147_v3  ;;  %v84_v7 = vld [vmem:[#allocation5 + $0xc8] sm:$0xff]  ;;  %v67_v12 = vld [vmem:[#allocation5 + $0x40] sm:$0xff] }
  0x2e   :  { %v2064_v33 = vsub.f32 %v76_v1, %v150_v4  ;;  %1720 = vmatprep.subr.bf16.mxu0 %v2048_v22  ;;  %v111_v34 = vand.u32 4294901760, %v63_v24  ;;  %v114_v35 = vand.u32 4294901760, %v64_v25  ;;  %v2701_v36 = vand.u32 4294901760, %v2042_v15 }
  0x2f   :  { %2796 = vst [vmem:[#allocation12_spill] sm:$0xff] %v2059_v29  ;;  %v2699_v37 = vand.u32 4294901760, %v2046_v21  ;;  %v2069_v39 = vpack.c.bf16 %v162_v31, %v159_v30  ;;  %v2071_v40 = vsub.f32 %v79_v18, %v159_v30  ;;  %v2073_v41 = vsub.f32 %v80_v19, %v162_v31  ;;  %v68_v31 = vld [vmem:[#allocation5 + $0x48] sm:$0xff] }
  0x30   :  { %v2704_v42 = vand.u32 4294901760, %v2062_v32  ;;  %v2703_v44 = vand.u32 4294901760, %v2064_v33  ;;  %v2077_v45 = vpack.c.bf16 %v114_v35, %v111_v34  ;;  %v2079_v46 = vsub.f32 %v63_v24, %v111_v34 }
  0x31   :  { %2797 = vst [vmem:[#allocation13_spill] sm:$0xff] %v2073_v41  ;;  %v2081_v47 = vsub.f32 %v64_v25, %v114_v35  ;;  %1722 = vmatpush3.bf16.msra.mxu0 %v2055_v27  ;;  %v319_v49 = vsub.f32 %v2042_v15, %v2701_v36  ;;  %v326_v50 = vsub.f32 %v2046_v21, %v2699_v37  ;;  %v165_v51 = vand.u32 4294901760, %v81_v38 }
  0x32   :  { %v431_v48 = vsub.f32 %v2062_v32, %v2704_v42  ;;  %1724 = vmatprep.subr.bf16.mxu0 %v2069_v39  ;;  %v438_v52 = vsub.f32 %v2064_v33, %v2703_v44  ;;  %v168_v53 = vand.u32 4294901760, %v82_v43  ;;  %v2698_v54 = vand.u32 4294901760, %v2050_v23  ;;  %v44_v44 = vld [vmem:[#allocation2 + $0x8] sm:$0xff]  ;;  %v43_v42 = vld [vmem:[#allocation2] sm:$0xff] }
  0x33   :  { %v2696_v55 = vand.u32 4294901760, %v2053_v26  ;;  %v320_v59 = vand.u32 4294901760, %v319_v49  ;;  %v327_v60 = vand.u32 4294901760, %v326_v50  ;;  %v2099_v61 = vsub.f32 %v81_v38, %v165_v51 }
  0x34   :  { %v432_v58 = vand.u32 4294901760, %v431_v48  ;;  %v439_v62 = vand.u32 4294901760, %v438_v52  ;;  %v2101_v63 = vpack.c.bf16 %v168_v53, %v165_v51  ;;  %v2103_v0 = vsub.f32 %v82_v43, %v168_v53 }
  0x35   :  { %v445_v1 = vsub.f32 %v2050_v23, %v2698_v54  ;;  %1726 = vmatpush3.bf16.msra.mxu0 %v2077_v45  ;;  %v1749_v2 = vpack.c.bf16 %v327_v60, %v320_v59  ;;  %v452_v3 = vsub.f32 %v2053_v26, %v2696_v55  ;;  %v117_v4 = vand.u32 4294901760, %v65_v56  ;;  %v86_v59 = vld [vmem:[#allocation5 + $0xd8] sm:$0xff] }
  0x36   :  { %v120_v5 = vand.u32 4294901760, %v66_v57  ;;  %v1747_v8 = vpack.c.bf16 %v439_v62, %v432_v58  ;;  %1728 = vmatprep.subr.bf16.mxu0 %v2101_v63  ;;  %v2694_v10 = vand.u32 4294901760, %v2057_v28  ;;  %v2693_v11 = vand.u32 4294901760, %v2059_v29  ;;  %v85_v58 = vld [vmem:[#allocation5 + $0xd0] sm:$0xff]  ;;  %v74_v54 = vld [vmem:[#allocation5 + $0x78] sm:$0xff] }
  0x37   :  { %v446_v9 = vand.u32 4294901760, %v445_v1  ;;  %v453_v13 = vand.u32 4294901760, %v452_v3  ;;  %v2117_v17 = vsub.f32 %v65_v56, %v117_v4  ;;  %v171_v25 = vand.u32 4294901760, %v83_v6  ;;  %v69_v3 = vld [vmem:[#allocation5 + $0x50] sm:$0xff] }
  0x38   :  { %v2115_v16 = vpack.c.bf16 %v120_v5, %v117_v4  ;;  %v2119_v18 = vsub.f32 %v66_v57, %v120_v5  ;;  %1748 = vmatprep.subr.bf16.mxu1 %v1747_v8  ;;  %v333_v19 = vsub.f32 %v2057_v28, %v2694_v10  ;;  %v340_v24 = vsub.f32 %v2059_v29, %v2693_v11  ;;  %v89_v11 = vld [vmem:[#allocation5 + $0xf0] sm:$0xff]  ;;  %v90_v10 = vld [vmem:[#allocation5 + $0xf8] sm:$0xff] }
  0x39   :  { %v174_v30 = vand.u32 4294901760, %v84_v7  ;;  %1750 = vmatpush3.bf16.msra.mxu1 %v1749_v2  ;;  %v1751_v34 = vpack.c.bf16 %v453_v13, %v446_v9  ;;  %v2691_v35 = vand.u32 4294901760, %v2071_v40  ;;  %v2689_v38 = vand.u32 4294901760, %v2073_v41 }
  0x3a   :  { %2798 = vst [vmem:[#allocation14_spill] sm:$0xff] %v2115_v16  ;;  %1730 = vmatpush3.bf16.msra.mxu0 %v2115_v16  ;;  %v123_v43 = vand.u32 4294901760, %v67_v12  ;;  %v334_v48 = vand.u32 4294901760, %v333_v19  ;;  %v341_v49 = vand.u32 4294901760, %v340_v24  ;;  %v2132_v51 = vsub.f32 %v83_v6, %v171_v25  ;;  %v70_v19 = vld [vmem:[#allocation5 + $0x58] sm:$0xff] }
  0x3b   :  { %v2130_v50 = vpack.c.bf16 %v174_v30, %v171_v25  ;;  %1752 = vmatprep.subr.bf16.mxu1 %v1751_v34  ;;  %v2134_v52 = vsub.f32 %v84_v7, %v174_v30  ;;  %v459_v53 = vsub.f32 %v2071_v40, %v2691_v35  ;;  %v466_v56 = vsub.f32 %v2073_v41, %v2689_v38 }
  0x3c   :  { %v126_v57 = vand.u32 4294901760, %v68_v31  ;;  %v1753_v60 = vpack.c.bf16 %v341_v49, %v334_v48  ;;  %v2143_v62 = vsub.f32 %v67_v12, %v123_v43  ;;  %v2688_v1 = vand.u32 4294901760, %v2079_v46 }
  0x3d   :  { %2799 = vst [vmem:[#allocation15_spill] sm:$0xff] %v2130_v50  ;;  %1732 = vmatprep.subr.bf16.mxu0 %v2130_v50  ;;  %v2686_v2 = vand.u32 4294901760, %v2081_v47  ;;  %v460_v4 = vand.u32 4294901760, %v459_v53  ;;  %v467_v5 = vand.u32 4294901760, %v466_v56  ;;  %v177_v12 = vand.u32 4294901760, %v85_v58 }
  0x3e   :  { %v2147_v6 = vpack.c.bf16 %v126_v57, %v123_v43  ;;  %v2149_v7 = vsub.f32 %v68_v31, %v126_v57  ;;  %1754 = vmatpush3.bf16.msra.mxu1 %v1753_v60  ;;  %v347_v8 = vsub.f32 %v2079_v46, %v2688_v1  ;;  %v180_v13 = vand.u32 4294901760, %v86_v59  ;;  %v72_v1 = vld [vmem:[#allocation5 + $0x68] sm:$0xff] }
  0x3f   :  { %v354_v9 = vsub.f32 %v2081_v47, %v2686_v2  ;;  %v1755_v24 = vpack.c.bf16 %v467_v5, %v460_v4  ;;  %v2685_v25 = vand.u32 4294901760, %v2099_v61  ;;  %v2687_v30 = vand.u32 4294901760, %v2103_v0  ;;  %v87_v4 = vld [vmem:[#allocation5 + $0xe0] sm:$0xff]  ;;  %v88_v5 = vld [vmem:[#allocation5 + $0xe8] sm:$0xff] }
  0x40   :  { %2800 = vst [vmem:[#allocation16_spill] sm:$0xff] %v2147_v6  ;;  %1734 = vmatpush3.bf16.msra.mxu0 %v2147_v6  ;;  %v129_v31 = vand.u32 4294901760, %v69_v3  ;;  %v348_v34 = vand.u32 4294901760, %v347_v8  ;;  %v2160_v48 = vpack.c.bf16 %v180_v13, %v177_v12  ;;  %v2162_v49 = vsub.f32 %v85_v58, %v177_v12  ;;  %v71_v12 = vld [vmem:[#allocation5 + $0x60] sm:$0xff] }
  0x41   :  { %v355_v43 = vand.u32 4294901760, %v354_v9  ;;  %1756 = vmatprep.subr.bf16.mxu1 %v1755_v24  ;;  %v2164_v53 = vsub.f32 %v86_v59, %v180_v13  ;;  %v473_v56 = vsub.f32 %v2099_v61, %v2685_v25  ;;  %v480_v57 = vsub.f32 %v2103_v0, %v2687_v30 }
  0x42   :  { %2801 = vst [vmem:[#allocation17_spill] sm:$0xff] %v2160_v48  ;;  %v132_v60 = vand.u32 4294901760, %v70_v19  ;;  %1736 = vmatprep.subr.bf16.mxu0 %v2160_v48  ;;  %v2173_v9 = vsub.f32 %v69_v3, %v129_v31  ;;  %v2690_v58 = vand.u32 4294901760, %v2117_v17  ;;  %v2692_v59 = vand.u32 4294901760, %v2119_v18 }
  0x43   :  { %v1757_v8 = vpack.c.bf16 %v355_v43, %v348_v34  ;;  %v474_v13 = vand.u32 4294901760, %v473_v56  ;;  %v481_v24 = vand.u32 4294901760, %v480_v57  ;;  %v183_v43 = vand.u32 4294901760, %v87_v4 }
  0x44   :  { %v2177_v25 = vpack.c.bf16 %v132_v60, %v129_v31  ;;  %v2179_v2 = vsub.f32 %v70_v19, %v132_v60  ;;  %v361_v34 = vsub.f32 %v2117_v17, %v2690_v58  ;;  %v368_v3 = vsub.f32 %v2119_v18, %v2692_v59 }
  0x45   :  { %1758 = vmatpush3.bf16.msra.mxu1 %v1757_v8  ;;  %v186_v30 = vand.u32 4294901760, %v88_v5  ;;  %v1759_v38 = vpack.c.bf16 %v481_v24, %v474_v13  ;;  %v2695_v31 = vand.u32 4294901760, %v2132_v51  ;;  %v2697_v19 = vand.u32 4294901760, %v2134_v52 }
  0x46   :  { %2802 = vst [vmem:[#allocation18_spill] sm:$0xff] %v2177_v25  ;;  %1738 = vmatpush3.bf16.msra.mxu0 %v2177_v25  ;;  %v135_v56 = vand.u32 4294901760, %v71_v12  ;;  %v362_v57 = vand.u32 4294901760, %v361_v34  ;;  %v369_v60 = vand.u32 4294901760, %v368_v3  ;;  %v2192_v58 = vsub.f32 %v87_v4, %v183_v43  ;;  %v73_v4 = vld [vmem:[#allocation5 + $0x70] sm:$0xff] }
  0x47   :  { %v2190_v8 = vpack.c.bf16 %v186_v30, %v183_v43  ;;  %1760 = vmatprep.subr.bf16.mxu1 %v1759_v38  ;;  %v2194_v35 = vsub.f32 %v88_v5, %v186_v30  ;;  %v487_v13 = vsub.f32 %v2132_v51, %v2695_v31  ;;  %v494_v24 = vsub.f32 %v2134_v52, %v2697_v19 }
  0x48   :  { %v138_v59 = vand.u32 4294901760, %v72_v1  ;;  %v1761_v34 = vpack.c.bf16 %v369_v60, %v362_v57  ;;  %v2203_v3 = vsub.f32 %v71_v12, %v135_v56  ;;  %v2700_v38 = vand.u32 4294901760, %v2143_v62 }
  0x49   :  { %2803 = vst [vmem:[#allocation19_spill] sm:$0xff] %v2190_v8  ;;  %1740 = vmatprep.subr.bf16.mxu0 %v2190_v8  ;;  %v2702_v30 = vand.u32 4294901760, %v2149_v7  ;;  %v488_v5 = vand.u32 4294901760, %v487_v13  ;;  %v495_v43 = vand.u32 4294901760, %v494_v24  ;;  %v189_v60 = vand.u32 4294901760, %v89_v11 }
  0x4a   :  { %v2207_v31 = vpack.c.bf16 %v138_v59, %v135_v56  ;;  %v2209_v55 = vsub.f32 %v72_v1, %v138_v59  ;;  %1762 = vmatpush3.bf16.msra.mxu1 %v1761_v34  ;;  %v375_v57 = vsub.f32 %v2143_v62, %v2700_v38  ;;  %v192_v19 = vand.u32 4294901760, %v90_v10 }
  0x4b   :  { %v382_v12 = vsub.f32 %v2149_v7, %v2702_v30  ;;  %v1763_v37 = vpack.c.bf16 %v495_v43, %v488_v5  ;;  %v2705_v56 = vand.u32 4294901760, %v2162_v49  ;;  %v2706_v1 = vand.u32 4294901760, %v2164_v53 }
  0x4c   :  { %2804 = vst [vmem:[#allocation20_spill] sm:$0xff] %v2207_v31  ;;  %1742 = vmatpush3.bf16.msra.mxu0 %v2207_v31  ;;  %v141_v59 = vand.u32 4294901760, %v73_v4  ;;  %v376_v13 = vand.u32 4294901760, %v375_v57  ;;  %v2220_v34 = vpack.c.bf16 %v192_v19, %v189_v60  ;;  %v2222_v38 = vsub.f32 %v89_v11, %v189_v60 }
  0x4d   :  { %v383_v24 = vand.u32 4294901760, %v382_v12  ;;  %1764 = vmatprep.subr.bf16.mxu1 %v1763_v37  ;;  %v2224_v36 = vsub.f32 %v90_v10, %v192_v19  ;;  %v501_v5 = vsub.f32 %v2162_v49, %v2705_v56  ;;  %v508_v43 = vsub.f32 %v2164_v53, %v2706_v1 }
  0x4e   :  { %2805 = vst [vmem:[#allocation21_spill] sm:$0xff] %v2220_v34  ;;  %2806 = vst [vmem:[#allocation22_spill] sm:$0xff] %v2222_v38  ;;  %v144_v30 = vand.u32 4294901760, %v74_v54  ;;  %1744 = vmatprep.subr.bf16.mxu0 %v2220_v34  ;;  %v2233_v12 = vsub.f32 %v73_v4, %v141_v59  ;;  %v2710_v37 = vand.u32 4294901760, %v2173_v9  ;;  %v2709_v10 = vand.u32 4294901760, %v2179_v2 }
  0x4f   :  { %2807 = vst [vmem:[#allocation23_spill] sm:$0xff] %v2224_v36  ;;  %v1765_v57 = vpack.c.bf16 %v383_v24, %v376_v13  ;;  %v502_v11 = vand.u32 4294901760, %v501_v5  ;;  %v509_v19 = vand.u32 4294901760, %v508_v43  ;;  %v2247_v13 = vand.u32 4294901760, %v44_v44 }
  0x50   :  { %2808 = vst [vmem:[#allocation24_spill] sm:$0xff] %v2233_v12  ;;  %v2237_v60 = vpack.c.bf16 %v144_v30, %v141_v59  ;;  %v2239_v56 = vsub.f32 %v74_v54, %v144_v30  ;;  %v389_v1 = vsub.f32 %v2173_v9, %v2710_v37  ;;  %v396_v4 = vsub.f32 %v2179_v2, %v2709_v10  ;;  %v45_v37 = vld [vmem:[#allocation2 + $0x10] sm:$0xff] }
  0x51   :  { %1766 = vmatpush3.bf16.msra.mxu1 %v1765_v57  ;;  %2811 = vst [vmem:[#allocation27_spill] sm:$0xff] %v2247_v13  ;;  %v2249_v24 = vand.u32 4294901760, %v43_v42  ;;  %v1767_v34 = vpack.c.bf16 %v509_v19, %v502_v11  ;;  %v2715_v59 = vand.u32 4294901760, %v2192_v58  ;;  %v2718_v54 = vand.u32 4294901760, %v2194_v35  ;;  %540 = vmatprep.mubr.f32.mxu1 %v2247_v13 }
  0x52   :  { %2809 = vst [vmem:[#allocation25_spill] sm:$0xff] %v2237_v60  ;;  %2810 = vst [vmem:[#allocation26_spill] sm:$0xff] %v2239_v56  ;;  %1746 = vmatpush3.bf16.msra.mxu0 %v2237_v60  ;;  %v1779_v30 = vpack.c.bf16 %v2064_v33, %v2062_v32  ;;  %v390_v5 = vand.u32 4294901760, %v389_v1  ;;  %v397_v43 = vand.u32 4294901760, %v396_v4  ;;  %v2257_v57 = vsub.f32 %v44_v44, %v2247_v13  ;;  %v46_v4 = vld [vmem:[#allocation2 + $0x18] sm:$0xff] }
  0x53   :  { %2812 = vst [vmem:[#allocation28_spill] sm:$0xff] %v2249_v24  ;;  %v2260_v10 = vsub.f32 %v43_v42, %v2249_v24  ;;  %1768 = vmatprep.subr.bf16.mxu1 %v1767_v34  ;;  %v515_v11 = vsub.f32 %v2192_v58, %v2715_v59  ;;  %v522_v19 = vsub.f32 %v2194_v35, %v2718_v54  ;;  %v2723_v1 = vand.u32 4294901760, %v2203_v3 }
  0x54   :  { %2813 = vst [vmem:[#allocation29_spill] sm:$0xff] %v2257_v57  ;;  %1780 = vmatprep.subr.bf16.mxu0 %v1779_v30  ;;  %v2728_v44 = vand.u32 4294901760, %v2209_v55  ;;  %v1769_v42 = vpack.c.bf16 %v397_v43, %v390_v5  ;;  %v2729_v60 = vand.u32 4294901760, %v2257_v57  ;;  %v1781_v13 = vpack.c.bf16 %v2046_v21, %v2042_v15 }
  0x55   :  { %2814 = vst [vmem:[#allocation30_spill] sm:$0xff] %v2260_v10  ;;  %v2732_v34 = vand.u32 4294901760, %v2260_v10  ;;  %v516_v59 = vand.u32 4294901760, %v515_v11  ;;  %v523_v31 = vand.u32 4294901760, %v522_v19  ;;  %v403_v30 = vsub.f32 %v2203_v3, %v2723_v1 }
  0x56   :  { %v410_v54 = vsub.f32 %v2209_v55, %v2728_v44  ;;  %1770 = vmatpush3.bf16.msra.mxu1 %v1769_v42  ;;  %v197_v5 = vsub.f32 %v2257_v57, %v2729_v60  ;;  %v2287_v8 = vand.u32 4294901760, %v46_v4  ;;  %v2289_v11 = vand.u32 4294901760, %v45_v37  ;;  %v48_v57 = vld [vmem:[#allocation2 + $0x28] sm:$0xff] }
  0x57   :  { %v203_v43 = vsub.f32 %v2260_v10, %v2732_v34  ;;  %v1771_v19 = vpack.c.bf16 %v523_v31, %v516_v59  ;;  %v404_v25 = vand.u32 4294901760, %v403_v30  ;;  %v2736_v48 = vand.u32 4294901760, %v2222_v38 }
  0x58   :  { %2815 = vst [vmem:[#allocation31_spill] sm:$0xff] %v2287_v8  ;;  %2816 = vst [vmem:[#allocation32_spill] sm:$0xff] %v2289_v11  ;;  %v411_v1 = vand.u32 4294901760, %v410_v54  ;;  %v198_v6 = vand.u32 4294901760, %v197_v5  ;;  %v2293_v42 = vsub.f32 %v46_v4, %v2287_v8  ;;  %v2296_v60 = vsub.f32 %v45_v37, %v2289_v11  ;;  %v47_v5 = vld [vmem:[#allocation2 + $0x20] sm:$0xff] }
  0x59   :  { %v204_v44 = vand.u32 4294901760, %v203_v43  ;;  %1772 = vmatprep.subr.bf16.mxu1 %v1771_v19  ;;  %v529_v10 = vsub.f32 %v2222_v38, %v2736_v48  ;;  %v2735_v31 = vand.u32 4294901760, %v2224_v36  ;;  %v1783_v59 = vpack.c.bf16 %v2053_v26, %v2050_v23 }
  0x5a   :  { %2817 = vst [vmem:[#allocation33_spill] sm:$0xff] %v2293_v42  ;;  %2818 = vst [vmem:[#allocation34_spill] sm:$0xff] %v2296_v60  ;;  %v1773_v34 = vpack.c.bf16 %v411_v1, %v404_v25  ;;  %199 = vmatprep.mubr.f32.mxu0 %v198_v6  ;;  %v2737_v54 = vand.u32 4294901760, %v2293_v42  ;;  %v2740_v4 = vand.u32 4294901760, %v2296_v60  ;;  %v2747_v37 = vand.u32 4294901760, %v2233_v12 }
  0x5b   :  { %v2751_v30 = vand.u32 4294901760, %v2239_v56  ;;  %205 = vmatmul.mubr.f32.vlgmr.msra.gmra.mrb[0].mxu0 %v204_v44  ;;  %v530_v25 = vand.u32 4294901760, %v529_v10  ;;  %v536_v1 = vsub.f32 %v2224_v36, %v2735_v31  ;;  %v1785_v43 = vpack.c.bf16 %v2059_v29, %v2057_v28 }
  0x5c   :  { %1774 = vmatpush3.bf16.msra.mxu1 %v1773_v34  ;;  %v2313_v6 = vand.u32 4294901760, %v48_v57  ;;  %1782 = vmatpush3.bf16.msra.mxu0 %v1781_v13  ;;  %v212_v19 = vsub.f32 %v2293_v42, %v2737_v54  ;;  %v218_v44 = vsub.f32 %v2296_v60, %v2740_v4  ;;  %v417_v10 = vsub.f32 %v2233_v12, %v2747_v37  ;;  %v50_v42 = vld [vmem:[#allocation2 + $0x38] sm:$0xff]  ;;  %v49_v4 = vld [vmem:[#allocation2 + $0x30] sm:$0xff]  ;;  %v52_v12 = vld [vmem:[#allocation2 + $0x48] sm:$0xff] }
  0x5d   :  { %v424_v34 = vsub.f32 %v2239_v56, %v2751_v30  ;;  %v537_v31 = vand.u32 4294901760, %v536_v1  ;;  %1784 = vmatprep.subr.bf16.mxu0 %v1783_v59  ;;  %v2330_v48 = vand.u32 4294901760, %v47_v5  ;;  %v1787_v54 = vpack.c.bf16 %v2073_v41, %v2071_v40 }
  0x5e   :  { %2819 = vst [vmem:[#allocation35_spill] sm:$0xff] %v2313_v6  ;;  %v2328_v13 = vsub.f32 %v48_v57, %v2313_v6  ;;  %v213_v60 = vand.u32 4294901760, %v212_v19  ;;  %v219_v50 = vand.u32 4294901760, %v218_v44  ;;  %v418_v16 = vand.u32 4294901760, %v417_v10  ;;  %v51_v57 = vld [vmem:[#allocation2 + $0x40] sm:$0xff] }
  0x5f   :  { %2821 = vst [vmem:[#allocation37_spill] sm:$0xff] %v2330_v48  ;;  %v425_v37 = vand.u32 4294901760, %v424_v34  ;;  %v1775_v29 = vpack.c.bf16 %v537_v31, %v530_v25  ;;  %v2336_v59 = vsub.f32 %v47_v5, %v2330_v48  ;;  %v1789_v56 = vpack.c.bf16 %v2081_v47, %v2079_v46 }
  0x60   :  { %2820 = vst [vmem:[#allocation36_spill] sm:$0xff] %v2328_v13  ;;  %v2755_v30 = vand.u32 4294901760, %v2328_v13  ;;  %214 = vmatprep.mubr.f32.mxu0 %v213_v60  ;;  %1786 = vmatpush3.bf16.msra.mxu0 %v1785_v43  ;;  %v2340_v41 = vand.u32 4294901760, %v50_v42  ;;  %v2342_v19 = vand.u32 4294901760, %v49_v4  ;;  %v2348_v25 = vand.u32 4294901760, %v52_v12  ;;  %v54_v60 = vld [vmem:[#allocation2 + $0x58] sm:$0xff] }
  0x61   :  { %2822 = vst [vmem:[#allocation38_spill] sm:$0xff] %v2336_v59  ;;  %v1777_v1 = vpack.c.bf16 %v425_v37, %v418_v16  ;;  %220 = vmatmul.mubr.f32.gmra.mrb[2].mxu0 %v219_v50  ;;  %1776 = vmatprep.subr.bf16.mxu1 %v1775_v29  ;;  %v2756_v5 = vand.u32 4294901760, %v2336_v59  ;;  %v1791_v29 = vpack.c.bf16 %v2103_v0, %v2099_v61  ;;  %v2358_v50 = vand.u32 4294901760, %v51_v57  ;;  %v53_v43 = vld [vmem:[#allocation2 + $0x50] sm:$0xff] }
  0x62   :  { %2823 = vst [vmem:[#allocation39_spill] sm:$0xff] %v2340_v41  ;;  %v227_v31 = vsub.f32 %v2328_v13, %v2755_v30  ;;  %1788 = vmatprep.subr.bf16.mxu0 %v1787_v54  ;;  %v2351_v16 = vsub.f32 %v50_v42, %v2340_v41  ;;  %v2354_v37 = vsub.f32 %v49_v4, %v2342_v19  ;;  %v56_v30 = vld [vmem:[#allocation2 + $0x68] sm:$0xff] }
  0x63   :  { %1778 = vmatpush3.bf16.msra.mxu1 %v1777_v1  ;;  %v233_v10 = vsub.f32 %v2336_v59, %v2756_v5  ;;  %v1793_v42 = vpack.c.bf16 %v2119_v18, %v2117_v17  ;;  %v2367_v54 = vsub.f32 %v52_v12, %v2348_v25  ;;  %v2372_v1 = vsub.f32 %v51_v57, %v2358_v50 }
  0x64   :  { %2824 = vst [vmem:[#allocation40_spill] sm:$0xff] %v2351_v16  ;;  %2825 = vst [vmem:[#allocation41_spill] sm:$0xff] %v2354_v37  ;;  %v228_v44 = vand.u32 4294901760, %v227_v31  ;;  %1812 = vmatprep.subr.bf16.mxu1 %v2040_v14  ;;  %1790 = vmatpush3.bf16.msra.mxu0 %v1789_v56  ;;  %v2764_v4 = vand.u32 4294901760, %v2351_v16  ;;  %v2769_v34 = vand.u32 4294901760, %v2354_v37  ;;  %v2374_v31 = vand.u32 4294901760, %v54_v60 }
  0x65   :  { %2826 = vst [vmem:[#allocation42_spill] sm:$0xff] %v2367_v54  ;;  %2827 = vst [vmem:[#allocation43_spill] sm:$0xff] %v2372_v1  ;;  %v234_v5 = vand.u32 4294901760, %v233_v10  ;;  %v1795_v12 = vpack.c.bf16 %v2134_v52, %v2132_v51  ;;  %v2380_v56 = vand.u32 4294901760, %v53_v43  ;;  %1792 = vmatprep.subr.bf16.mxu0 %v1791_v29 }
  0x66   :  { %229 = vmatprep.mubr.f32.mxu0 %v228_v44  ;;  %542 = vmatmul.mubr.f32.vlgmr.msra.gmra.mrb[0].mxu1 %v2249_v24  ;;  %v242_v57 = vsub.f32 %v2351_v16, %v2764_v4  ;;  %v248_v44 = vsub.f32 %v2354_v37, %v2769_v34  ;;  %v2392_v59 = vsub.f32 %v54_v60, %v2374_v31  ;;  %v55_v24 = vld [vmem:[#allocation2 + $0x60] sm:$0xff]  ;;  %v2402_v16 = vand.u32 4294901760, %v56_v30 }
  0x67   :  { %1814 = vmatpush3.bf16.msra.mxu1 %v2044_v20  ;;  %547 = vmatprep.mubr.f32.mxu1 %v2287_v8  ;;  %v2829_v20 = vand.u32 4294901760, %v2367_v54  ;;  %v1797_v4 = vpack.c.bf16 %v2149_v7, %v2143_v62  ;;  %v2400_v8 = vsub.f32 %v53_v43, %v2380_v56 }
  0x68   :  { %2828 = vst [vmem:[#allocation44_spill] sm:$0xff] %v2392_v59  ;;  %235 = vmatmul.mubr.f32.gmra.mrb[4].mxu0 %v234_v5  ;;  %v243_v34 = vand.u32 4294901760, %v242_v57  ;;  %v249_v10 = vand.u32 4294901760, %v248_v44  ;;  %1816 = vmatprep.subr.bf16.mxu1 %v2048_v22  ;;  %v2831_v5 = vand.u32 4294901760, %v2372_v1  ;;  %v2776_v29 = vand.u32 4294901760, %v2392_v59  ;;  %v57_v44 = vld [vmem:[#allocation2 + $0x70] sm:$0xff] }
  0x69   :  { %v257_v13 = vsub.f32 %v2367_v54, %v2829_v20  ;;  %2830 = vst [vmem:[#allocation45_spill] sm:$0xff] %v2400_v8  ;;  %1794 = vmatpush3.bf16.msra.mxu0 %v1793_v42  ;;  %v58_v20 = vld [vmem:[#allocation2 + $0x78] sm:$0xff]  ;;  %v2781_v43 = vand.u32 4294901760, %v2400_v8  ;;  %v2412_v37 = vsub.f32 %v56_v30, %v2402_v16  ;;  %v2414_v57 = vand.u32 4294901760, %v55_v24 }
  0x6a   :  { %v263_v60 = vsub.f32 %v2372_v1, %v2831_v5  ;;  %549 = vmatmul.mubr.f32.gmra.mrb[2].mxu1 %v2289_v11  ;;  %1796 = vmatprep.subr.bf16.mxu0 %v1795_v12  ;;  %v272_v5 = vsub.f32 %v2392_v59, %v2776_v29  ;;  %v1801_v12 = vpack.c.bf16 %v2179_v2, %v2173_v9  ;;  %v2432_v11 = vand.u32 4294901760, %v58_v20 }
  0x6b   :  { %v258_v54 = vand.u32 4294901760, %v257_v13  ;;  %2832 = vst [vmem:[#allocation46_spill] sm:$0xff] %v2412_v37  ;;  %244 = vmatprep.mubr.f32.mxu0 %v243_v34  ;;  %1818 = vmatpush3.bf16.msra.mxu1 %v2055_v27  ;;  %v1799_v13 = vpack.c.bf16 %v2164_v53, %v2162_v49  ;;  %v278_v30 = vsub.f32 %v2400_v8, %v2781_v43  ;;  %v2786_v34 = vand.u32 4294901760, %v2412_v37 }
  0x6c   :  { %v264_v42 = vand.u32 4294901760, %v263_v60  ;;  %250 = vmatmul.mubr.f32.gmra.mrb[6].mxu0 %v249_v10  ;;  %554 = vmatprep.mubr.f32.mxu1 %v2313_v6  ;;  %v2430_v60 = vsub.f32 %v55_v24, %v2414_v57  ;;  %v273_v29 = vand.u32 4294901760, %v272_v5  ;;  %v1803_v10 = vpack.c.bf16 %v2194_v35, %v2192_v58 }
  0x6d   :  { %259 = vmatprep.mubr.f32.mxu0 %v258_v54  ;;  %1820 = vmatprep.subr.bf16.mxu1 %v2069_v39  ;;  %v1805_v6 = vpack.c.bf16 %v2209_v55, %v2203_v3  ;;  %v2439_v59 = vand.u32 4294901760, %v57_v44  ;;  %v287_v24 = vsub.f32 %v2412_v37, %v2786_v34  ;;  %v2447_v43 = vsub.f32 %v58_v20, %v2432_v11 }
  0x6e   :  { %556 = vmatmul.mubr.f32.gmra.mrb[4].mxu1 %v2330_v48  ;;  %1798 = vmatpush3.bf16.msra.mxu0 %v1797_v4  ;;  %v1807_v5 = vpack.c.bf16 %v2224_v36, %v2222_v38  ;;  %v279_v8 = vand.u32 4294901760, %v278_v30  ;;  %v2833_v4 = vand.u32 4294901760, %v2062_v32  ;;  %v2834_v34 = vand.u32 4294901760, %v2064_v33 }
  0x6f   :  { %1822 = vmatpush3.bf16.msra.mxu1 %v2077_v45  ;;  %561 = vmatprep.mubr.f32.mxu1 %v2340_v41  ;;  %v2454_v48 = vsub.f32 %v57_v44, %v2439_v59  ;;  %v2835_v54 = vand.u32 4294901760, %v2042_v15  ;;  %v2836_v20 = vand.u32 4294901760, %v2046_v21  ;;  %v288_v36 = vand.u32 4294901760, %v287_v24 }
  0x70   :  { %v1843_v37 = vpack.c.bf16 %v2834_v34, %v2833_v4  ;;  %265 = vmatmul.mubr.f32.gmra.mrb[8].mxu0 %v264_v42  ;;  %1800 = vmatprep.subr.bf16.mxu0 %v1799_v13  ;;  %v2837_v38 = vand.u32 4294901760, %v2430_v60  ;;  %v301_v44 = vand.u32 4294901760, %v2447_v43  ;;  %v2838_v41 = vand.u32 4294901760, %v2050_v23  ;;  %v2841_v42 = vld [vmem:[#allocation12_spill] sm:$0xff] }
  0x71   :  { %v1845_v1 = vpack.c.bf16 %v2836_v20, %v2835_v54  ;;  %v2839_v32 = vand.u32 4294901760, %v2053_v26  ;;  %274 = vmatprep.mubr.f32.mxu0 %v273_v29  ;;  %1824 = vmatprep.subr.bf16.mxu1 %v2101_v63  ;;  %v307_v15 = vand.u32 4294901760, %v2454_v48  ;;  %v2840_v21 = vand.u32 4294901760, %v2057_v28 }
  0x72   :  { %v293_v30 = vsub.f32 %v2430_v60, %v2837_v38  ;;  %v2842_v13 = vand.u32 4294901760, %v2841_v42  ;;  %v2843_v24 = vand.u32 4294901760, %v2071_v40  ;;  %v2844_v38 = vld [vmem:[#allocation13_spill] sm:$0xff]  ;;  %v2846_v23 = vand.u32 4294901760, %v2079_v46  ;;  %563 = vmatmul.mubr.f32.gmra.mrb[6].mxu1 %v2342_v19  ;;  %1802 = vmatpush3.bf16.msra.mxu0 %v1801_v12  ;;  %v2852_v42 = vld [vmem:[#allocation14_spill] sm:$0xff] }
  0x73   :  { %v1847_v33 = vpack.c.bf16 %v2839_v32, %v2838_v41  ;;  %v2845_v54 = vand.u32 4294901760, %v2844_v38  ;;  %v2847_v26 = vand.u32 4294901760, %v2081_v47  ;;  %v302_v28 = vsub.f32 %v2447_v43, %v301_v44  ;;  %1826 = vmatpush3.bf16.msra.mxu1 %v2852_v42  ;;  %568 = vmatprep.mubr.f32.mxu1 %v2348_v25 }
  0x74   :  { %v1849_v34 = vpack.c.bf16 %v2842_v13, %v2840_v21  ;;  %v2848_v29 = vand.u32 4294901760, %v2099_v61  ;;  %v2849_v20 = vand.u32 4294901760, %v2103_v0  ;;  %v2850_v32 = vand.u32 4294901760, %v2117_v17  ;;  %280 = vmatmul.mubr.f32.gmra.mrb[10].mxu0 %v279_v8  ;;  %1804 = vmatprep.subr.bf16.mxu0 %v1803_v10  ;;  %v2863_v8 = vld [vmem:[#allocation15_spill] sm:$0xff] }
  0x75   :  { %v1851_v4 = vpack.c.bf16 %v2845_v54, %v2843_v24  ;;  %v1853_v41 = vpack.c.bf16 %v2847_v26, %v2846_v23  ;;  %v2851_v21 = vand.u32 4294901760, %v2119_v18  ;;  %v308_v47 = vsub.f32 %v2454_v48, %v307_v15  ;;  %289 = vmatprep.mubr.f32.mxu0 %v288_v36  ;;  %1828 = vmatprep.subr.bf16.mxu1 %v2863_v8 }
  0x76   :  { %v1855_v40 = vpack.c.bf16 %v2849_v20, %v2848_v29  ;;  %v2853_v12 = vand.u32 4294901760, %v2132_v51  ;;  %v2854_v61 = vand.u32 4294901760, %v2134_v52  ;;  %v2855_v0 = vand.u32 4294901760, %v2143_v62  ;;  %570 = vmatmul.mubr.f32.gmra.mrb[8].mxu1 %v2358_v50  ;;  %1806 = vmatpush3.bf16.msra.mxu0 %v1805_v6  ;;  %v2868_v20 = vld [vmem:[#allocation16_spill] sm:$0xff]  ;;  %v2872_v6 = vld [vmem:[#allocation29_spill] sm:$0xff] }
  0x77   :  { %v1857_v46 = vpack.c.bf16 %v2851_v21, %v2850_v32  ;;  %v2856_v17 = vand.u32 4294901760, %v2149_v7  ;;  %v294_v18 = vand.u32 4294901760, %v293_v30  ;;  %v2857_v38 = vand.u32 4294901760, %v2162_v49  ;;  %1830 = vmatpush3.bf16.msra.mxu1 %v2868_v20  ;;  %575 = vmatprep.mubr.f32.mxu1 %v2374_v31  ;;  %v2875_v32 = vld [vmem:[#allocation21_spill] sm:$0xff] }
  0x78   :  { %v1859_v13 = vpack.c.bf16 %v2854_v61, %v2853_v12  ;;  %v2858_v54 = vand.u32 4294901760, %v2164_v53  ;;  %v2859_v51 = vand.u32 4294901760, %v2173_v9  ;;  %v2860_v52 = vand.u32 4294901760, %v2179_v2  ;;  %v2866_v2 = vld [vmem:[#allocation24_spill] sm:$0xff]  ;;  %v2867_v9 = vld [vmem:[#allocation26_spill] sm:$0xff]  ;;  %1808 = vmatprep.subr.bf16.mxu0 %v1807_v5  ;;  %v2876_v21 = vld [vmem:[#allocation33_spill] sm:$0xff] }
  0x79   :  { %v2511_v24 = vpack.c.bf16 %v2856_v17, %v2855_v0  ;;  %v2861_v62 = vand.u32 4294901760, %v2192_v58  ;;  %v2862_v7 = vand.u32 4294901760, %v2194_v35  ;;  %v303_v49 = vand.u32 4294901760, %v302_v28  ;;  %295 = vmatmul.mubr.f32.gmra.mrb[12].mxu0 %v294_v18  ;;  %v2869_v35 = vld [vmem:[#allocation17_spill] sm:$0xff]  ;;  %v2873_v28 = vld [vmem:[#allocation20_spill] sm:$0xff]  ;;  %v2874_v5 = vld [vmem:[#allocation30_spill] sm:$0xff] }
  0x7a   :  { %v2517_v23 = vpack.c.bf16 %v2858_v54, %v2857_v38  ;;  %v2523_v26 = vpack.c.bf16 %v2860_v52, %v2859_v51  ;;  %v2864_v53 = vand.u32 4294901760, %v2203_v3  ;;  %v2865_v10 = vand.u32 4294901760, %v2209_v55  ;;  %1832 = vmatprep.subr.bf16.mxu1 %v2869_v35  ;;  %577 = vmatmul.mubr.f32.gmra.mrb[10].mxu1 %v2380_v56  ;;  %v2870_v55 = vld [vmem:[#allocation18_spill] sm:$0xff]  ;;  %v2871_v3 = vld [vmem:[#allocation19_spill] sm:$0xff]  ;;  %v2880_v61 = vld [vmem:[#allocation36_spill] sm:$0xff] }
  0x7b   :  { %v2529_v29 = vpack.c.bf16 %v2862_v7, %v2861_v62  ;;  %v1809_v58 = vpack.c.bf16 %v2867_v9, %v2866_v2  ;;  %v309_v36 = vand.u32 4294901760, %v308_v47  ;;  %304 = vmatprep.mubr.f32.mxu0 %v303_v49  ;;  %1834 = vmatpush3.bf16.msra.mxu1 %v2870_v55  ;;  %v2877_v47 = vld [vmem:[#allocation25_spill] sm:$0xff]  ;;  %v2879_v12 = vld [vmem:[#allocation34_spill] sm:$0xff]  ;;  %v2881_v0 = vand.u32 4294901760, %v2874_v5  ;;  %v2885_v18 = vld [vmem:[#allocation40_spill] sm:$0xff] }
  0x7c   :  { %v2536_v30 = vpack.c.bf16 %v2865_v10, %v2864_v53  ;;  %582 = vmatprep.mubr.f32.mxu1 %v2402_v16  ;;  %1836 = vmatprep.subr.bf16.mxu1 %v2871_v3  ;;  %v2884_v17 = vld [vmem:[#allocation38_spill] sm:$0xff]  ;;  %v2905_v62 = vand.u32 4294901760, %v2867_v9  ;;  %v2908_v49 = vld [vmem:[#allocation27_spill] sm:$0xff]  ;;  %v2909_v53 = vand.u32 4294901760, %v2430_v60  ;;  %v2910_v10 = vld [vmem:[#allocation28_spill] sm:$0xff] }
  0x7d   :  { %1810 = vmatpush3.bf16.msra.mxu0 %v1809_v58  ;;  %v2889_v38 = vld [vmem:[#allocation42_spill] sm:$0xff] }
  0x7e   :  { %310 = vmatmul.mubr.f32.gmra.mrb[14].mxu0 %v309_v36  ;;  %1844 = vmatprep.subr.bf16.mxu0 %v1843_v37  ;;  %v2878_v37 = vand.u32 4294901760, %v2872_v6 }
  0x7f   :  { %726 = vmatprep.mubr.f32.mxu0 %v2872_v6  ;;  %584 = vmatmul.mubr.f32.gmra.mrb[12].mxu1 %v2414_v57 }
  0x80   :  { %1838 = vmatpush3.bf16.msra.mxu1 %v2873_v28  ;;  %589 = vmatprep.mubr.f32.mxu1 %v2432_v11 }
  0x81   :  { %1840 = vmatprep.subr.bf16.mxu1 %v2875_v32 }
  0x82   :  { %729 = vmatmul.mubr.f32.vlgmr.msra.gmra.mrb[16].mxu0 %v2874_v5 }
  0x83   :  { %1846 = vmatpush3.bf16.msra.mxu0 %v1845_v1  ;;  %735 = vmatprep.mubr.f32.mxu0 %v2876_v21  ;;  %v2882_v1 = vld [vmem:[#allocation11_spill] sm:$0xff] }
  0x84   :  { %591 = vmatmul.mubr.f32.gmra.mrb[14].mxu1 %v2439_v59  ;;  %1848 = vmatprep.subr.bf16.mxu0 %v1847_v33  ;;  %v2883_v33 = vand.u32 4294901760, %v2876_v21 }
  0x85   :  { %1842 = vmatpush3.bf16.msra.mxu1 %v2877_v47  ;;  %896 = vmatprep.mubr.f32.mxu1 %v2878_v37 }
  0x86   :  { %738 = vmatmul.mubr.f32.gmra.mrb[18].mxu0 %v2879_v12  ;;  %1876 = vmatprep.subr.bf16.mxu1 %v2040_v14  ;;  %v2886_v14 = vand.u32 4294901760, %v2879_v12 }
  0x87   :  { %1850 = vmatpush3.bf16.msra.mxu0 %v1849_v34  ;;  %744 = vmatprep.mubr.f32.mxu0 %v2880_v61  ;;  %v2887_v34 = vand.u32 4294901760, %v2880_v61 }
  0x88   :  { %900 = vmatmul.mubr.f32.vlgmr.msra.gmra.mrb[16].mxu1 %v2881_v0  ;;  %1852 = vmatprep.subr.bf16.mxu0 %v1851_v4  ;;  %v2888_v4 = vld [vmem:[#allocation41_spill] sm:$0xff] }
  0x89   :  { %1878 = vmatpush3.bf16.msra.mxu1 %v2882_v1  ;;  %907 = vmatprep.mubr.f32.mxu1 %v2883_v33 }
  0x8a   :  { %747 = vmatmul.mubr.f32.gmra.mrb[20].mxu0 %v2884_v17  ;;  %1880 = vmatprep.subr.bf16.mxu1 %v2048_v22  ;;  %v2890_v22 = vand.u32 4294901760, %v2884_v17 }
  0x8b   :  { %1854 = vmatpush3.bf16.msra.mxu0 %v1853_v41  ;;  %753 = vmatprep.mubr.f32.mxu0 %v2885_v18  ;;  %v2891_v41 = vand.u32 4294901760, %v2885_v18 }
  0x8c   :  { %911 = vmatmul.mubr.f32.gmra.mrb[18].mxu1 %v2886_v14  ;;  %1856 = vmatprep.subr.bf16.mxu0 %v1855_v40  ;;  %v2893_v40 = vld [vmem:[#allocation44_spill] sm:$0xff] }
  0x8d   :  { %1882 = vmatpush3.bf16.msra.mxu1 %v2055_v27  ;;  %918 = vmatprep.mubr.f32.mxu1 %v2887_v34  ;;  %v2892_v27 = vld [vmem:[#allocation43_spill] sm:$0xff]  ;;  %v2903_v52 = vand.u32 4294901760, %v2893_v40 }
  0x8e   :  { %756 = vmatmul.mubr.f32.gmra.mrb[22].mxu0 %v2888_v4  ;;  %1884 = vmatprep.subr.bf16.mxu1 %v2069_v39  ;;  %v2894_v39 = vand.u32 4294901760, %v2888_v4 }
  0x8f   :  { %1858 = vmatpush3.bf16.msra.mxu0 %v1857_v46  ;;  %762 = vmatprep.mubr.f32.mxu0 %v2889_v38  ;;  %v2896_v46 = vld [vmem:[#allocation45_spill] sm:$0xff] }
  0x90   :  { %922 = vmatmul.mubr.f32.gmra.mrb[20].mxu1 %v2890_v22  ;;  %1860 = vmatprep.subr.bf16.mxu0 %v1859_v13  ;;  %v2898_v13 = vand.u32 4294901760, %v2892_v27 }
  0x91   :  { %1886 = vmatpush3.bf16.msra.mxu1 %v2077_v45  ;;  %929 = vmatprep.mubr.f32.mxu1 %v2891_v41  ;;  %v2895_v45 = vand.u32 4294901760, %v2889_v38 }
  0x92   :  { %765 = vmatmul.mubr.f32.gmra.mrb[24].mxu0 %v2892_v27  ;;  %1888 = vmatprep.subr.bf16.mxu1 %v2101_v63  ;;  %v2897_v63 = vld [vmem:[#allocation46_spill] sm:$0xff] }
  0x93   :  { %1862 = vmatpush3.bf16.msra.mxu0 %v2511_v24  ;;  %771 = vmatprep.mubr.f32.mxu0 %v2893_v40  ;;  %v2899_v24 = vld [vmem:[#allocation22_spill] sm:$0xff] }
  0x94   :  { %933 = vmatmul.mubr.f32.gmra.mrb[22].mxu1 %v2894_v39  ;;  %1864 = vmatprep.subr.bf16.mxu0 %v2517_v23  ;;  %v2900_v54 = vand.u32 4294901760, %v2899_v24  ;;  %v2901_v23 = vld [vmem:[#allocation23_spill] sm:$0xff] }
  0x95   :  { %1890 = vmatpush3.bf16.msra.mxu1 %v2852_v42  ;;  %940 = vmatprep.mubr.f32.mxu1 %v2895_v45  ;;  %v2902_v42 = vand.u32 4294901760, %v2901_v23 }
  0x96   :  { %774 = vmatmul.mubr.f32.gmra.mrb[26].mxu0 %v2896_v46  ;;  %1892 = vmatprep.subr.bf16.mxu1 %v2863_v8  ;;  %v2907_v8 = vand.u32 4294901760, %v2897_v63 }
  0x97   :  { %1866 = vmatpush3.bf16.msra.mxu0 %v2523_v26  ;;  %780 = vmatprep.mubr.f32.mxu0 %v2897_v63  ;;  %v1871_v51 = vpack.c.bf16 %v2902_v42, %v2900_v54  ;;  %v2904_v26 = vand.u32 4294901760, %v2866_v2  ;;  %v2913_v2 = vld [vmem:[#allocation35_spill] sm:$0xff] }
  0x98   :  { %944 = vmatmul.mubr.f32.gmra.mrb[24].mxu1 %v2898_v13  ;;  %1868 = vmatprep.subr.bf16.mxu0 %v2529_v29  ;;  %v2906_v29 = vand.u32 4294901760, %v2896_v46 }
  0x99   :  { %1894 = vmatpush3.bf16.msra.mxu1 %v2868_v20  ;;  %951 = vmatprep.mubr.f32.mxu1 %v2903_v52  ;;  %v1873_v7 = vpack.c.bf16 %v2905_v62, %v2904_v26 }
  0x9a   :  { %783 = vmatmul.mubr.f32.gmra.mrb[28].mxu0 %v2430_v60  ;;  %1896 = vmatprep.subr.bf16.mxu1 %v2869_v35  ;;  %v2912_v60 = vld [vmem:[#allocation32_spill] sm:$0xff] }
  0x9b   :  { %1870 = vmatpush3.bf16.msra.mxu0 %v2536_v30  ;;  %789 = vmatprep.mubr.f32.mxu0 %v2447_v43  ;;  %v2911_v30 = vld [vmem:[#allocation31_spill] sm:$0xff]  ;;  %v2914_v43 = vld [vmem:[#allocation37_spill] sm:$0xff] }
  0x9c   :  { %955 = vmatmul.mubr.f32.gmra.mrb[26].mxu1 %v2906_v29  ;;  %1872 = vmatprep.subr.bf16.mxu0 %v1871_v51 }
  0x9d   :  { %1898 = vmatpush3.bf16.msra.mxu1 %v2870_v55  ;;  %962 = vmatprep.mubr.f32.mxu1 %v2907_v8 }
  0x9e   :  { %792 = vmatmul.mubr.f32.gmra.mrb[30].mxu0 %v2454_v48  ;;  %1900 = vmatprep.subr.bf16.mxu1 %v2871_v3 }
  0x9f   :  { %1874 = vmatpush3.bf16.msra.mxu0 %v1873_v7  ;;  %1143 = vmatprep.mubr.f32.mxu0 %v2908_v49 }
  0xa0   :  { %966 = vmatmul.mubr.f32.gmra.mrb[28].mxu1 %v2909_v53 }
  0xa1   :  { %1902 = vmatpush3.bf16.msra.mxu1 %v2873_v28  ;;  %973 = vmatprep.mubr.f32.mxu1 %v301_v44  ;;  %v2915_v44 = vld [vmem:[#allocation39_spill] sm:$0xff] }
  0xa2   :  { %1145 = vmatmul.mubr.f32.vlgmr.msra.gmra.mrb[32].mxu0 %v2910_v10  ;;  %1904 = vmatprep.subr.bf16.mxu1 %v2875_v32 }
  0xa3   :  { %1150 = vmatprep.mubr.f32.mxu0 %v2911_v30 }
  0xa4   :  { %977 = vmatmul.mubr.f32.gmra.mrb[30].mxu1 %v307_v15 }
  0xa5   :  { %1906 = vmatpush3.bf16.msra.mxu1 %v2877_v47  ;;  %1296 = vmatprep.mubr.f32.mxu1 %v2908_v49 }
  0xa6   :  { %1152 = vmatmul.mubr.f32.gmra.mrb[34].mxu0 %v2912_v60 }
  0xa7   :  { %1157 = vmatprep.mubr.f32.mxu0 %v2913_v2 }
  0xa8   :  { %1298 = vmatmul.mubr.f32.vlgmr.msra.gmra.mrb[32].mxu1 %v2910_v10 }
  0xa9   :  { %1303 = vmatprep.mubr.f32.mxu1 %v2911_v30 }
  0xaa   :  { %1159 = vmatmul.mubr.f32.gmra.mrb[36].mxu0 %v2914_v43 }
  0xab   :  { %1164 = vmatprep.mubr.f32.mxu0 %v2915_v44 }
  0xac   :  { %1305 = vmatmul.mubr.f32.gmra.mrb[34].mxu1 %v2912_v60 }
  0xad   :  { %1310 = vmatprep.mubr.f32.mxu1 %v2913_v2 }
  0xae   :  { %1166 = vmatmul.mubr.f32.gmra.mrb[38].mxu0 %v2342_v19 }
  0xaf   :  { %1171 = vmatprep.mubr.f32.mxu0 %v2348_v25 }
  0xb0   :  { %1312 = vmatmul.mubr.f32.gmra.mrb[36].mxu1 %v2914_v43 }
  0xb1   :  { %1317 = vmatprep.mubr.f32.mxu1 %v2915_v44 }
  0xb2   :  { %1173 = vmatmul.mubr.f32.gmra.mrb[40].mxu0 %v2358_v50 }
  0xb3   :  { %1178 = vmatprep.mubr.f32.mxu0 %v2374_v31 }
  0xb4   :  { %1319 = vmatmul.mubr.f32.gmra.mrb[38].mxu1 %v2342_v19 }
  0xb5   :  { %1324 = vmatprep.mubr.f32.mxu1 %v2348_v25 }
  0xb6   :  { %1180 = vmatmul.mubr.f32.gmra.mrb[42].mxu0 %v2380_v56 }
  0xb7   :  { %1185 = vmatprep.mubr.f32.mxu0 %v2402_v16 }
  0xb8   :  { %1326 = vmatmul.mubr.f32.gmra.mrb[40].mxu1 %v2358_v50 }
  0xb9   :  { %1331 = vmatprep.mubr.f32.mxu1 %v2374_v31  ;;  %v1378_v31 = vld [vmem:[%s2683_s2] ss:$0 sm:$0xff]  ;;  %s1992_s2 = smov [#allocation7]  }
  0xba   :  { %1187 = vmatmul.mubr.f32.gmra.mrb[44].mxu0 %v2414_v57  ;;  %s1365_s13 = sshll.u32 %s1992_s2, 4  ;;  %s1366_s13 = int_to_ptr.vmem [resolvable:$true] %s1365_s13 }
  0xbb   :  { %1192 = vmatprep.mubr.f32.mxu0 %v2432_v11  ;;  %s1958_s14 = scalar_lea.vmem %s1366_s13, 1024  ;;  %p1963_p3 = scmp.lt.s32.totalorder %s1366_s13, %s1366_s13 }
  0xbc   :  { %1333 = vmatmul.mubr.f32.gmra.mrb[42].mxu1 %v2380_v56  ;;  %p1959_p2 = scmp.ne.s32.totalorder %s1366_s13, %s1958_s14  ;;  %p1964_p4 = scmp.lt.s32.totalorder %s1958_s14, %s1958_s14 }
  0xbd   :  { %1338 = vmatprep.mubr.f32.mxu1 %v2402_v16 }
  0xbe   :  { %1194 = vmatmul.mubr.f32.gmra.mrb[46].mxu0 %v2439_v59  ;;  %p1965_p5 = por %p1964_p4, %p1963_p3 }
  0xc0   :  { %1340 = vmatmul.mubr.f32.gmra.mrb[44].mxu1 %v2414_v57  ;;  %p1966_p6 = pnand %p1965_p5, %p1959_p2 }
  0xc1   :  { %1345 = vmatprep.mubr.f32.mxu1 %v2432_v11 }
  0xc4   :  { %1347 = vmatmul.mubr.f32.gmra.mrb[46].mxu1 %v2439_v59 }
 0x12e   :  { %v1411_v48 = vpop.f32.mrb[0].mxu0 }
 0x12f   :  { %v1412_v19 = vpop.f32.mrb[1].mxu0 }
 0x130   :  { %v1413_v25 = vadd.f32 %v1412_v19, %v1411_v48 }
 0x132   :  { %v207_v9 = vadd.f32 %v1413_v25, %v1378_v31 }
 0x134   :  { %v1414_v50 = vpop.f32.mrb[2].mxu0 }
 0x135   :  { %v1415_v15 = vpop.f32.mrb[3].mxu0 }
 0x136   :  { %v1416_v56 = vadd.f32 %v1415_v15, %v1414_v50 }
 0x138   :  { %v222_v11 = vadd.f32 %v1416_v56, %v1378_v31 }
 0x139   :  { %v1467_v16 = vpop.f32.mrb[0].mxu1 }
 0x13a   :  { %v1468_v58 = vpop.f32.mrb[1].mxu1 }
 0x13b   :  { %v1469_v20 = vadd.f32 %v1468_v58, %v1467_v16  ;;  %v1417_v36 = vpop.f32.mrb[4].mxu0 }
 0x13c   :  { %v1418_v57 = vpop.f32.mrb[5].mxu0 }
 0x13d   :  { %v544_v35 = vadd.f32 %v1469_v20, %v207_v9  ;;  %v1470_v55 = vpop.f32.mrb[2].mxu1  ;;  %v1419_v59 = vadd.f32 %v1418_v57, %v1417_v36 }
 0x13e   :  { %v1471_v3 = vpop.f32.mrb[3].mxu1 }
 0x13f   :  { %v1472_v6 = vadd.f32 %v1471_v3, %v1470_v55  ;;  %v1420_v28 = vpop.f32.mrb[6].mxu0  ;;  %v237_v21 = vadd.f32 %v1419_v59, %v1378_v31 }
 0x140   :  { %v1421_v5 = vpop.f32.mrb[7].mxu0 }
 0x141   :  { %v551_v32 = vadd.f32 %v1472_v6, %v222_v11  ;;  %v1473_v47 = vpop.f32.mrb[4].mxu1  ;;  %v1422_v37 = vadd.f32 %v1421_v5, %v1420_v28 }
 0x142   :  { %v1474_v12 = vpop.f32.mrb[5].mxu1 }
 0x143   :  { %v1475_v61 = vadd.f32 %v1474_v12, %v1473_v47  ;;  %v1423_v0 = vpop.f32.mrb[8].mxu0  ;;  %v252_v17 = vadd.f32 %v1422_v37, %v1378_v31 }
 0x144   :  { %v1424_v1 = vpop.f32.mrb[9].mxu0 }
 0x145   :  { %v558_v33 = vadd.f32 %v1475_v61, %v237_v21  ;;  %v1476_v18 = vpop.f32.mrb[6].mxu1  ;;  %v1425_v14 = vadd.f32 %v1424_v1, %v1423_v0 }
 0x146   :  { %v1477_v34 = vpop.f32.mrb[7].mxu1 }
 0x147   :  { %v1478_v4 = vadd.f32 %v1477_v34, %v1476_v18  ;;  %v1426_v38 = vpop.f32.mrb[10].mxu0  ;;  %v267_v27 = vadd.f32 %v1425_v14, %v1378_v31 }
 0x148   :  { %v1427_v22 = vpop.f32.mrb[11].mxu0 }
 0x149   :  { %v565_v41 = vadd.f32 %v1478_v4, %v252_v17  ;;  %v1479_v40 = vpop.f32.mrb[8].mxu1  ;;  %v1428_v39 = vadd.f32 %v1427_v22, %v1426_v38 }
 0x14a   :  { %v1480_v45 = vpop.f32.mrb[9].mxu1 }
 0x14b   :  { %v1481_v46 = vadd.f32 %v1480_v45, %v1479_v40  ;;  %v282_v54 = vadd.f32 %v1428_v39, %v1378_v31 }
 0x14c   :  { %v1429_v63 = vpop.f32.mrb[12].mxu0 }
 0x14d   :  { %v1430_v13 = vpop.f32.mrb[13].mxu0  ;;  %v572_v24 = vadd.f32 %v1481_v46, %v267_v27  ;;  %v1482_v23 = vpop.f32.mrb[10].mxu1 }
 0x14e   :  { %v1431_v42 = vadd.f32 %v1430_v13, %v1429_v63  ;;  %v1483_v51 = vpop.f32.mrb[11].mxu1 }
 0x14f   :  { %v1484_v52 = vadd.f32 %v1483_v51, %v1482_v23 }
 0x150   :  { %v297_v7 = vadd.f32 %v1431_v42, %v1378_v31 }
 0x151   :  { %v1432_v26 = vpop.f32.mrb[14].mxu0  ;;  %v579_v29 = vadd.f32 %v1484_v52, %v282_v54 }
 0x152   :  { %v1433_v62 = vpop.f32.mrb[15].mxu0  ;;  %v1485_v49 = vpop.f32.mrb[12].mxu1 }
 0x153   :  { %v1434_v8 = vadd.f32 %v1433_v62, %v1432_v26  ;;  %v1486_v53 = vpop.f32.mrb[13].mxu1 }
 0x154   :  { %v1487_v30 = vadd.f32 %v1486_v53, %v1485_v49 }
 0x155   :  { %v1523_v10 = vpop.f32.mrb[16].mxu0  ;;  %v312_v2 = vadd.f32 %v1434_v8, %v1378_v31 }
 0x156   :  { %v1524_v60 = vpop.f32.mrb[17].mxu0  ;;  %v586_v43 = vadd.f32 %v1487_v30, %v297_v7 }
 0x157   :  { %v1525_v44 = vadd.f32 %v1524_v60, %v1523_v10  ;;  %v1488_v48 = vpop.f32.mrb[14].mxu1 }
 0x158   :  { %v1489_v19 = vpop.f32.mrb[15].mxu1 }
 0x159   :  { %v731_v25 = vadd.f32 %v1525_v44, %v544_v35  ;;  %v1526_v50 = vpop.f32.mrb[18].mxu0  ;;  %v1490_v15 = vadd.f32 %v1489_v19, %v1488_v48 }
 0x15a   :  { %v1527_v56 = vpop.f32.mrb[19].mxu0 }
 0x15b   :  { %v593_v9 = vadd.f32 %v1490_v15, %v312_v2  ;;  %v1528_v16 = vadd.f32 %v1527_v56, %v1526_v50  ;;  %v1579_v58 = vpop.f32.mrb[16].mxu1 }
 0x15c   :  { %v1580_v20 = vpop.f32.mrb[17].mxu1 }
 0x15d   :  { %v740_v36 = vadd.f32 %v1528_v16, %v551_v32  ;;  %v1529_v57 = vpop.f32.mrb[20].mxu0  ;;  %v1581_v11 = vadd.f32 %v1580_v20, %v1579_v58 }
 0x15e   :  { %v1530_v55 = vpop.f32.mrb[21].mxu0 }
 0x15f   :  { %v1531_v59 = vadd.f32 %v1530_v55, %v1529_v57  ;;  %v902_v3 = vadd.f32 %v1581_v11, %v731_v25  ;;  %v1582_v6 = vpop.f32.mrb[18].mxu1 }
 0x160   :  { %v1583_v31 = vpop.f32.mrb[19].mxu1 }
 0x161   :  { %v749_v28 = vadd.f32 %v1531_v59, %v558_v33  ;;  %v1532_v5 = vpop.f32.mrb[22].mxu0  ;;  %v1584_v21 = vadd.f32 %v1583_v31, %v1582_v6 }
 0x162   :  { %v1533_v47 = vpop.f32.mrb[23].mxu0 }
 0x163   :  { %v1534_v35 = vadd.f32 %v1533_v47, %v1532_v5  ;;  %v913_v37 = vadd.f32 %v1584_v21, %v740_v36  ;;  %v1585_v12 = vpop.f32.mrb[20].mxu1 }
 0x164   :  { %v1586_v61 = vpop.f32.mrb[21].mxu1 }
 0x165   :  { %v758_v0 = vadd.f32 %v1534_v35, %v565_v41  ;;  %v1535_v1 = vpop.f32.mrb[24].mxu0  ;;  %v1587_v17 = vadd.f32 %v1586_v61, %v1585_v12 }
 0x166   :  { %v1536_v18 = vpop.f32.mrb[25].mxu0 }
 0x167   :  { %v1537_v32 = vadd.f32 %v1536_v18, %v1535_v1  ;;  %v924_v14 = vadd.f32 %v1587_v17, %v749_v28  ;;  %v1588_v34 = vpop.f32.mrb[22].mxu1 }
 0x168   :  { %v1589_v4 = vpop.f32.mrb[23].mxu1 }
 0x169   :  { %v767_v38 = vadd.f32 %v1537_v32, %v572_v24  ;;  %v1538_v22 = vpop.f32.mrb[26].mxu0  ;;  %v1590_v27 = vadd.f32 %v1589_v4, %v1588_v34 }
 0x16a   :  { %v1539_v40 = vpop.f32.mrb[27].mxu0 }
 0x16b   :  { %v1540_v33 = vadd.f32 %v1539_v40, %v1538_v22  ;;  %v935_v39 = vadd.f32 %v1590_v27, %v758_v0  ;;  %v1591_v45 = vpop.f32.mrb[24].mxu1 }
 0x16c   :  { %v1592_v46 = vpop.f32.mrb[25].mxu1 }
 0x16d   :  { %v776_v63 = vadd.f32 %v1540_v33, %v579_v29  ;;  %v1541_v13 = vpop.f32.mrb[28].mxu0  ;;  %v1593_v54 = vadd.f32 %v1592_v46, %v1591_v45 }
 0x16e   :  { %v1542_v23 = vpop.f32.mrb[29].mxu0 }
 0x16f   :  { %v1543_v41 = vadd.f32 %v1542_v23, %v1541_v13  ;;  %v946_v42 = vadd.f32 %v1593_v54, %v767_v38  ;;  %v1594_v51 = vpop.f32.mrb[26].mxu1 }
 0x170   :  { %v1595_v52 = vpop.f32.mrb[27].mxu1 }
 0x171   :  { %v785_v26 = vadd.f32 %v1543_v41, %v586_v43  ;;  %v1544_v62 = vpop.f32.mrb[30].mxu0  ;;  %v1596_v7 = vadd.f32 %v1595_v52, %v1594_v51 }
 0x172   :  { %v1545_v8 = vpop.f32.mrb[31].mxu0 }
 0x173   :  { %v1546_v24 = vadd.f32 %v1545_v8, %v1544_v62  ;;  %v957_v49 = vadd.f32 %v1596_v7, %v776_v63  ;;  %v1597_v53 = vpop.f32.mrb[28].mxu1 }
 0x174   :  { %v1598_v10 = vpop.f32.mrb[29].mxu1 }
 0x175   :  { %v794_v30 = vadd.f32 %v1546_v24, %v593_v9  ;;  %v1635_v60 = vpop.f32.mrb[32].mxu0  ;;  %v1599_v2 = vadd.f32 %v1598_v10, %v1597_v53 }
 0x176   :  { %v1636_v44 = vpop.f32.mrb[33].mxu0 }
 0x177   :  { %v968_v29 = vadd.f32 %v1599_v2, %v785_v26  ;;  %v1637_v48 = vadd.f32 %v1636_v44, %v1635_v60  ;;  %v1600_v19 = vpop.f32.mrb[30].mxu1 }
 0x178   :  { %v1601_v25 = vpop.f32.mrb[31].mxu1 }
 0x179   :  { %v1147_v50 = vadd.f32 %v1637_v48, %v902_v3  ;;  %v1638_v15 = vpop.f32.mrb[34].mxu0  ;;  %v1602_v56 = vadd.f32 %v1601_v25, %v1600_v19 }
 0x17a   :  { %v1639_v16 = vpop.f32.mrb[35].mxu0 }
 0x17b   :  { %v979_v43 = vadd.f32 %v1602_v56, %v794_v30  ;;  %v1640_v58 = vadd.f32 %v1639_v16, %v1638_v15  ;;  %v1691_v20 = vpop.f32.mrb[32].mxu1 }
 0x17c   :  { %v1692_v36 = vpop.f32.mrb[33].mxu1 }
 0x17d   :  { %v1154_v57 = vadd.f32 %v1640_v58, %v913_v37  ;;  %v1641_v11 = vpop.f32.mrb[36].mxu0  ;;  %v1693_v55 = vadd.f32 %v1692_v36, %v1691_v20 }
 0x17e   :  { %v1642_v59 = vpop.f32.mrb[37].mxu0 }
 0x17f   :  { %v1643_v9 = vadd.f32 %v1642_v59, %v1641_v11  ;;  %v1300_v6 = vadd.f32 %v1693_v55, %v1147_v50  ;;  %v1694_v31 = vpop.f32.mrb[34].mxu1 }
 0x180   :  { %v1695_v28 = vpop.f32.mrb[35].mxu1 }
 0x181   :  { %v1161_v5 = vadd.f32 %v1643_v9, %v924_v14  ;;  %1352 = vst [vmem:[#allocation7] sm:$0xff] %v1300_v6  ;;  %v1644_v21 = vpop.f32.mrb[38].mxu0  ;;  %v1696_v47 = vadd.f32 %v1695_v28, %v1694_v31 }
 0x182   :  { %v1645_v3 = vpop.f32.mrb[39].mxu0 }
 0x183   :  { %v1646_v35 = vadd.f32 %v1645_v3, %v1644_v21  ;;  %v1307_v12 = vadd.f32 %v1696_v47, %v1154_v57  ;;  %v1697_v61 = vpop.f32.mrb[36].mxu1 }
 0x184   :  { %v1698_v0 = vpop.f32.mrb[37].mxu1 }
 0x185   :  { %v1168_v1 = vadd.f32 %v1646_v35, %v935_v39  ;;  %1353 = vst [vmem:[#allocation7 + $0x8] sm:$0xff] %v1307_v12  ;;  %v1647_v17 = vpop.f32.mrb[40].mxu0  ;;  %v1699_v37 = vadd.f32 %v1698_v0, %v1697_v61 }
 0x186   :  { %v1648_v18 = vpop.f32.mrb[41].mxu0 }
 0x187   :  { %v1649_v32 = vadd.f32 %v1648_v18, %v1647_v17  ;;  %v1314_v34 = vadd.f32 %v1699_v37, %v1161_v5  ;;  %v1700_v4 = vpop.f32.mrb[38].mxu1 }
 0x188   :  { %v1701_v38 = vpop.f32.mrb[39].mxu1 }
 0x189   :  { %v1175_v22 = vadd.f32 %v1649_v32, %v946_v42  ;;  %1354 = vst [vmem:[#allocation7 + $0x10] sm:$0xff] %v1314_v34  ;;  %v1650_v14 = vpop.f32.mrb[42].mxu0  ;;  %v1702_v27 = vadd.f32 %v1701_v38, %v1700_v4 }
 0x18a   :  { %v1651_v40 = vpop.f32.mrb[43].mxu0 }
 0x18b   :  { %v1652_v33 = vadd.f32 %v1651_v40, %v1650_v14  ;;  %v1321_v45 = vadd.f32 %v1702_v27, %v1168_v1  ;;  %v1703_v46 = vpop.f32.mrb[40].mxu1 }
 0x18c   :  { %v1704_v63 = vpop.f32.mrb[41].mxu1 }
 0x18d   :  { %v1182_v13 = vadd.f32 %v1652_v33, %v957_v49  ;;  %1355 = vst [vmem:[#allocation7 + $0x18] sm:$0xff] %v1321_v45  ;;  %v1653_v39 = vpop.f32.mrb[44].mxu0  ;;  %v1705_v54 = vadd.f32 %v1704_v63, %v1703_v46 }
 0x18e   :  { %v1654_v23 = vpop.f32.mrb[45].mxu0 }
 0x18f   :  { %v1655_v41 = vadd.f32 %v1654_v23, %v1653_v39  ;;  %v1328_v51 = vadd.f32 %v1705_v54, %v1175_v22  ;;  %v1706_v52 = vpop.f32.mrb[42].mxu1 }
 0x190   :  { %v1707_v26 = vpop.f32.mrb[43].mxu1 }
 0x191   :  { %v1189_v62 = vadd.f32 %v1655_v41, %v968_v29  ;;  %1356 = vst [vmem:[#allocation7 + $0x20] sm:$0xff] %v1328_v51  ;;  %v1656_v42 = vpop.f32.mrb[46].mxu0  ;;  %v1708_v7 = vadd.f32 %v1707_v26, %v1706_v52 }
 0x192   :  { %v1657_v8 = vpop.f32.mrb[47].mxu0 }
 0x193   :  { %v1658_v24 = vadd.f32 %v1657_v8, %v1656_v42  ;;  %v1335_v53 = vadd.f32 %v1708_v7, %v1182_v13  ;;  %v1709_v10 = vpop.f32.mrb[44].mxu1 }
 0x194   :  { %v1710_v30 = vpop.f32.mrb[45].mxu1 }
 0x195   :  { %v1196_v60 = vadd.f32 %v1658_v24, %v979_v43  ;;  %1357 = vst [vmem:[#allocation7 + $0x28] sm:$0xff] %v1335_v53  ;;  %v1711_v49 = vadd.f32 %v1710_v30, %v1709_v10 }
 0x197   :  { %v1342_v2 = vadd.f32 %v1711_v49, %v1189_v62  ;;  %v1712_v44 = vpop.f32.mrb[46].mxu1 }
 0x198   :  { %v1713_v48 = vpop.f32.mrb[47].mxu1 }
 0x199   :  { %1358 = vst [vmem:[#allocation7 + $0x30] sm:$0xff] %v1342_v2  ;;  %v1714_v19 = vadd.f32 %v1713_v48, %v1712_v44 }
 0x19b   :  { %v1349_v25 = vadd.f32 %v1714_v19, %v1196_v60 }
 0x19d   :  { %1359 = vst [vmem:[#allocation7 + $0x38] sm:$0xff] %v1349_v25 }
 0x19e   :  { %1969 = shalt.err (!%p1966_p6)
}
 0x19f   :  { %s1970_s17 = scalar_lea.hbm %s2684_s3, 1024 }
 0x1a0   :  { %p1971_p7 = scmp.ne.s32.totalorder %s2684_s3, %s1970_s17  ;;  %p1974_p8 = scmp.lt.u32.totalorder %s1970_s17, %s2684_s3 }
 0x1a2   :  { %p1976_p9 = pnand %p1974_p8, %p1971_p7 }
 0x1a4   :  { %1979 = shalt.err (!%p1976_p9)
}
 0x1a5   :  { %1371 = dma.vmem_to_hbm [thread:$0]  %s1366_s13, 1024, %s2684_s3, [#allocation4], %s1990_s0, %s1990_s0, %s1991_s9  }
 0x1a6   :  { %1984 = dma.done.wait [#allocation4], 1024  }
 0x1a7   :  { %1985 = vsyncadd [#allocation4], 4294966272 }
 0x1a8   :  { %1375 = vsyncpa [#allocation3], 1 }
 0x1a9   :  { %1376 = vsyncpa [#allocation6], 1 }
 0x1aa   :  { %1377 = vsyncpa [#allocation4], 1 }

</bundles_post_ra>
